<compile_context>
chip_gen: v7x
topology: tpu7x:2x2x1
jax: 0.10.0
libtpu: 0.0.40
codegen_flags: <defaults>
</compile_context>

<pallas_src>
import jax
import jax.numpy as jnp
from jax.experimental import pallas as pl
from jax.experimental.pallas import tpu as pltpu


# Below this many bytes of x the fixed pallas_call launch/DMA overhead dwarfs
# the work; XLA's fused dot is strictly faster there.
_PALLAS_MIN_BYTES = 256 * 1024

# Total budget for the pipeline buffers (2 x-tile buffers + 2 out-tile buffers).
# <= ~16 MiB keeps v7x (32 MiB scoped default, 64 MiB physical per TC) safe and
# is far more than enough to sit near the HBM roofline on v5e/v6e.
_PIPELINE_VMEM_BUDGET = 16 * 1024 * 1024
# Explicit scoped-VMEM request: above v5e's 16 MiB default, comfortably below
# v7x's 32 MiB scoped default / 64 MiB physical (v5e/v6e have 128 MiB physical).
_VMEM_LIMIT_BYTES = 24 * 1024 * 1024


def _round_up(x, m):
    return ((x + m - 1) // m) * m


def _linreg_kernel(b_ref, x_ref, w_ref, o_ref):
    # (tm, D) @ (D, 1) on the MXU with f32 accumulation, plus scalar bias.
    # MXU utilization is irrelevant (N=1): compute hides under the x-streaming
    # DMA, which is the binding resource.
    acc = jnp.dot(x_ref[...], w_ref[...], preferred_element_type=jnp.float32)
    o_ref[...] = (acc + b_ref[0]).astype(o_ref.dtype)


def _choose_batch_tile(batch, input_dim, itemsize):
    """Byte-based row-tile sizing (lane-padding aware); keep >=2 grid steps."""
    # VMEM (and, worst case, the streaming DMA) pad the minor dim to 128 lanes
    # for both the (tm, D) input tile and the (tm, 1) output tile.
    x_row_bytes = _round_up(max(input_dim, 1), 128) * itemsize
    out_row_bytes = 128 * itemsize
    per_row = 2 * (x_row_bytes + out_row_bytes)          # double-buffered in + out
    tm = max(_PIPELINE_VMEM_BUDGET // per_row, 8)

    batch8 = _round_up(batch, 8)
    tm = min(tm, batch8)
    # For non-tiny batches keep at least 2 grid steps so the "parallel" batch
    # axis can shard tiles across v7x's two TensorCores (no-op on v5e/v6e).
    if tm >= batch8 and batch8 >= 512:
        tm = _round_up(batch8 // 2, 8)
    return max((tm // 8) * 8, 8)                          # f32 sublane granularity


def multivariate_linear_forward(x, W, b, *, force_pallas=False):
    """y = x @ W + b (forward pass of MultivariateLinearModel)."""
    batch, input_dim = x.shape

    if not force_pallas and x.size * x.dtype.itemsize < _PALLAS_MIN_BYTES:
        # Tiny problem: plain XLA beats the fixed pallas_call overhead.
        return x @ W + b

    itemsize = x.dtype.itemsize
    tm = _choose_batch_tile(batch, input_dim, itemsize)
    grid = (pl.cdiv(batch, tm),)

    b_vec = jnp.reshape(b, (1,)).astype(jnp.float32)      # scalar -> SMEM vector

    # Advisory cost estimate; bytes include the 128-lane padding of narrow x
    # and of the (batch, 1) output so XLA sees realistic HBM traffic.
    cost = pl.CostEstimate(
        flops=2 * batch * input_dim,
        transcendentals=0,
        bytes_accessed=itemsize * (batch * _round_up(input_dim, 128)
                                   + _round_up(input_dim, 8) * 128
                                   + batch * 128),
    )

    # TODO(synk): a lane-dense output ((1, tm) blocks via an in-kernel transpose
    # of the (tm, 1) MXU result, or K packed to 128 lanes with a block-diagonal
    # W produced upstream) would remove the 128-lane padding on the output
    # buffers/writeback for input_dim < 128; not applied here pending verified
    # Mosaic support for the (tm, 1) -> (1, tm) relayout.
    # TODO(synk): add a K grid axis + VMEM accumulator only if input_dim is so
    # large (~>=100K f32) that even an 8-row tile exceeds the VMEM budget; sweep
    # pipeline_mode=pl.Buffered(3) on the x spec for v7x once tiles are fixed.
    return pl.pallas_call(
        _linreg_kernel,
        out_shape=jax.ShapeDtypeStruct((batch, 1), x.dtype),
        grid_spec=pltpu.PrefetchScalarGridSpec(
            num_scalar_prefetch=0,
            grid=grid,
            in_specs=[
                pl.BlockSpec(memory_space=pltpu.SMEM),               # bias scalar
                pl.BlockSpec((tm, input_dim), lambda i: (i, 0)),     # stream x tiles
                pl.BlockSpec((input_dim, 1), lambda i: (0, 0)),      # W stays resident
            ],
            out_specs=pl.BlockSpec((tm, 1), lambda i: (i, 0)),
        ),
        compiler_params=pltpu.CompilerParams(
            dimension_semantics=("parallel",),   # shard batch tiles across v7x's 2 TCs
            vmem_limit_bytes=_VMEM_LIMIT_BYTES,
        ),
        cost_estimate=cost,
    )(b_vec, x, W)


if __name__ == "__main__":
    key = jax.random.PRNGKey(0)
    k_small, k_mid, k_big, kw = jax.random.split(key, 4)

    # Deterministic parameters (mirrors torch.randn(input_dim, 1); nonzero bias
    # so the +b path is actually exercised).
    input_dim = 32
    W = jax.random.normal(kw, (input_dim, 1), dtype=jnp.float32)
    b = jnp.float32(0.75)

    # 1) Small shape consistent with the module; force the Pallas path so the
    #    kernel itself runs despite the small-problem fallback.
    x_small = jax.random.normal(k_small, (8, input_dim), dtype=jnp.float32)
    y_small = multivariate_linear_forward(x_small, W, b, force_pallas=True)
    jax.block_until_ready(y_small)
    assert y_small.shape == (8, 1)
    assert jnp.allclose(y_small, x_small @ W + b, atol=1e-4, rtol=1e-5)

    # 2) Batch that is not a multiple of 8 -> partial boundary tile (output
    #    writeback is clipped by Pallas) and a 2-step grid.
    x_mid = jax.random.normal(k_mid, (777, input_dim), dtype=jnp.float32)
    y_mid = multivariate_linear_forward(x_mid, W, b, force_pallas=True)
    jax.block_until_ready(y_mid)
    assert y_mid.shape == (777, 1)
    assert jnp.allclose(y_mid, x_mid @ W + b, atol=1e-4, rtol=1e-5)

    # 3) Larger batch: exercises the >=2-grid-step split (two 1000-row tiles).
    x_big = jax.random.normal(k_big, (2000, input_dim), dtype=jnp.float32)
    y_big = multivariate_linear_forward(x_big, W, b, force_pallas=True)
    jax.block_until_ready(y_big)
    assert y_big.shape == (2000, 1)
    assert jnp.allclose(y_big, x_big @ W + b, atol=1e-4, rtol=1e-5)

    print("KERNEL_OK")
</pallas_src>

<mosaic_0001>
module attributes {stable_mosaic.version = 11 : i64} {
  func.func @_linreg_kernel(%arg0: i32, %arg1: memref<1xf32, #tpu.memory_space<smem>>, %arg2: memref<8x32xf32, #tpu.memory_space<vmem>>, %arg3: memref<32x1xf32, #tpu.memory_space<vmem>>, %arg4: memref<8x1xf32, #tpu.memory_space<vmem>>) attributes {dimension_semantics = [#tpu.dimension_semantics<parallel>], iteration_bounds = array<i64: 1>, scalar_prefetch = 0 : i64, scratch_operands = 0 : i64, tpu.core_type = #tpu.core_type<tc>, window_params = [{transform_indices = @transform_0, window_bounds = array<i64: 1>}, {transform_indices = @transform_1, window_bounds = array<i64: 8, 32>}, {pipeline_mode = #tpu.pipeline_mode<synchronous>, transform_indices = @transform_2, window_bounds = array<i64: 32, 1>}, {transform_indices = @transform_3, window_bounds = array<i64: 8, 1>}]} {
    %c0 = arith.constant 0 : index
    %c0_0 = arith.constant 0 : index
    %0 = vector.load %arg2[%c0, %c0_0] : memref<8x32xf32, #tpu.memory_space<vmem>>, vector<8x32xf32>
    %c0_1 = arith.constant 0 : index
    %c0_2 = arith.constant 0 : index
    %1 = vector.load %arg3[%c0_1, %c0_2] : memref<32x1xf32, #tpu.memory_space<vmem>>, vector<32x1xf32>
    %cst = arith.constant dense<0.000000e+00> : vector<8x1xf32>
    %2 = tpu.matmul %0, %1, %cst {dimension_numbers = #tpu.dot_dimension_numbers<[1], [0], [0], [1], [0, 0, 1, 1], [], []>} : vector<8x32xf32>, vector<32x1xf32>, vector<8x1xf32> -> vector<8x1xf32>
    %c0_3 = arith.constant 0 : index
    %3 = memref.load %arg1[%c0_3] : memref<1xf32, #tpu.memory_space<smem>>
    %4 = vector.broadcast %3 : f32 to vector<8x1xf32>
    %5 = arith.addf %2, %4 : vector<8x1xf32>
    %c0_4 = arith.constant 0 : index
    %c0_5 = arith.constant 0 : index
    %6 = vector.load %arg4[%c0_4, %c0_5] : memref<8x1xf32, #tpu.memory_space<vmem>>, vector<8x1xf32>
    tpu.vector_store %arg4[%c0_4, %c0_5], %5 {strides = array<i32>} : memref<8x1xf32, #tpu.memory_space<vmem>>, vector<8x1xf32>,
    return
  }
  func.func @transform_0(%arg0: i32) -> i32 {
    %c0_i32 = arith.constant 0 : i32
    %c0_i32_0 = arith.constant 0 : i32
    return %c0_i32 : i32
  }
  func.func @transform_1(%arg0: i32) -> (i32, i32) {
    %c0_i32 = arith.constant 0 : i32
    %c0_i32_0 = arith.constant 0 : i32
    return %arg0, %c0_i32 : i32, i32
  }
  func.func @transform_2(%arg0: i32) -> (i32, i32) {
    %c0_i32 = arith.constant 0 : i32
    %c0_i32_0 = arith.constant 0 : i32
    %c0_i32_1 = arith.constant 0 : i32
    return %c0_i32, %c0_i32_0 : i32, i32
  }
  func.func @transform_3(%arg0: i32) -> (i32, i32) {
    %c0_i32 = arith.constant 0 : i32
    %c0_i32_0 = arith.constant 0 : i32
    return %arg0, %c0_i32 : i32, i32
  }
}

</mosaic_0001>

<bundles_post_ra>
// kernel: tpu_custom_call.1
= control target key start
LH: loop header
LB: loop body
LE: loop exit
PB: predicated region body
PF: predicated region fallthrough
CT: control target
= control target key end

     0   :  { %v128_v0 = vmov 0.0|0.0   ;;  %vm129_vm0 = vmmov 0   ;;  %v130_v4 = vmov 0.0   ;;  %vm22_vm1 = vcmask 261120   ;;  %s172_s2 = inlined_call_operand.vmem [shape: f32[32,1], index: 2, kind: input, shape index: {}]   ;;  %s173_s1 = inlined_call_operand.vmem [shape: f32[8,32], index: 1, kind: input, shape index: {}]   ;;  %s174_s0 = inlined_call_operand.<no memory space> [shape: f32[1], index: 0, kind: input, shape index: {}]   ;;  %s175_s3 = inlined_call_operand.vmem [shape: f32[8,1], index: 3, kind: output, shape index: {}]  }
   0x1   :  { %119 = vmatprep.subr.bf16.mxu0 %v128_v0  ;;  %v16_v1 = vld [vmem:[%s172_s2] sm:$0xff]  ;;  %v17_v2 = vld [vmem:[%s172_s2 + $0x8] sm:$0xff]  ;;  %v18_v3 = vld [vmem:[%s172_s2 + $0x10] sm:$0xff]  ;;  %116 = vmatprep.mubr.msk.f32.mxu0 %vm129_vm0, %v130_v4  ;;  %v21_v9 = vstv %s174_s0  ;;  %vm96_vm2 = vcmask 7168  }
   0x2   :  { %v120_v5 = vpack.c.bf16 %v17_v2, %v16_v1  ;;  %v19_v6 = vld [vmem:[%s172_s2 + $0x18] sm:$0xff]  ;;  %v15_v8 = vld [vmem:[%s173_s1] sm:$0xff] }
   0x3   :  { %v123_v7 = vpack.c.bf16 %v19_v6, %v18_v3 }
   0x4   :  { %121 = vmatpush3.bf16.msra.mxu0 %v120_v5 }
   0x5   :  { %122 = vmatprep.subr.bf16.mxu0 %v128_v0 }
   0x8   :  { %124 = vmatpush3.bf16.msra.mxu0 %v123_v7 }
   0xb   :  { %117 = vmatmul.mubr.msk.f32.vlgmr.msra.gmra.mrb[0].mxu0 %vm22_vm1, %v15_v8 }
  0xde   :  { %v92_v10 = vpop.f32.mrb[0].mxu0 }
  0xdf   :  { %v93_v11 = vadd.f32 %v92_v10, %v21_v9  ;;  %v118_v12 = vpop.f32.mrb[1].mxu0 }
  0xe1   :  { %97 = vst.msk [vmem:[%s175_s3] sm:$0xff] %vm96_vm2, %v93_v11 }

</bundles_post_ra>
